<compile_context>
chip_gen: v7x
topology: tpu7x:2x2x1
jax: 0.10.0
libtpu: 0.0.40
codegen_flags: <defaults>
</compile_context>

<pallas_src>
import jax
import jax.numpy as jnp
from jax.experimental import pallas as pl
from jax.experimental.pallas import tpu as pltpu


def _round_up(x, m):
    return (x + m - 1) // m * m


# --------------------------------------------------------------------------
# kernels
# --------------------------------------------------------------------------
def _sage_layer1_kernel(inv_ref, a_ref, xm_ref, xs_ref,
                        w2l_ref, w2r_ref, b2_ref,
                        m2_ref, s2_ref, acc_ref):
    k = pl.program_id(1)

    @pl.when(k == 0)
    def _():
        acc_ref[...] = jnp.zeros_like(acc_ref)

    # un-normalized aggregation partial sum:  acc += B[i, k] @ Xm[k]
    # (bf16 x bf16 on the MXU, f32 accumulation)
    acc_ref[...] += jnp.dot(a_ref[...], xm_ref[...],
                            preferred_element_type=jnp.float32)

    @pl.when(k == pl.num_programs(1) - 1)
    def _():
        # layer-1 epilogue once per row block: mean-normalize (f32), add
        # self/bias term, ReLU.  Dropout(0.5) in eval mode == identity.
        h = jnp.maximum(inv_ref[...] * acc_ref[...] + xs_ref[...], 0.0)
        hb = h.astype(jnp.bfloat16)
        # pre-apply layer-2 weights (reassociation: A @ (h @ W2_l)) so the
        # second NxN contraction only needs RHS width cout_pad.
        m2_ref[...] = jnp.dot(hb, w2l_ref[...],
                              preferred_element_type=jnp.float32
                              ).astype(m2_ref.dtype)
        s2_ref[...] = (jnp.dot(hb, w2r_ref[...],
                               preferred_element_type=jnp.float32)
                       + b2_ref[...])


def _sage_layer2_kernel(inv_ref, a_ref, m2_ref, s2_ref, out_ref, acc_ref):
    k = pl.program_id(1)

    @pl.when(k == 0)
    def _():
        acc_ref[...] = jnp.zeros_like(acc_ref)

    acc_ref[...] += jnp.dot(a_ref[...], m2_ref[...],
                            preferred_element_type=jnp.float32)

    @pl.when(k == pl.num_programs(1) - 1)
    def _():
        out_ref[...] = (inv_ref[...] * acc_ref[...]
                        + s2_ref[...]).astype(out_ref.dtype)


# --------------------------------------------------------------------------
# wrapper
# --------------------------------------------------------------------------
def build_adjacency(edge_index, n_pad):
    """Exact bf16 edge counts B[i, j] = mult(j->i), plus f32 1/in_deg."""
    src, dst = edge_index[0], edge_index[1]
    b = jnp.zeros((n_pad, n_pad), jnp.float32)
    b = b.at[dst, src].add(1.0)
    deg = b.sum(axis=1, keepdims=True)
    inv_deg = (1.0 / jnp.maximum(deg, 1.0)).astype(jnp.float32)
    # small integer counts are exact in bf16; normalization stays in f32.
    return b.astype(jnp.bfloat16), inv_deg


def graphsage_forward(x, edge_index, params, *, tile_m=1024, tile_k=512):
    n, cin = x.shape
    hid = params["w1l"].shape[1]
    cout = params["w2l"].shape[1]

    # lane-dense, block-aligned padded sizes; tile_m a multiple of tile_k.
    n128 = _round_up(n, 128)
    tile_k = min(tile_k, n128)
    tile_m = max(tile_k, (min(tile_m, n128) // tile_k) * tile_k)
    n_pad = _round_up(n, tile_m)
    gi, gk = n_pad // tile_m, n_pad // tile_k
    hid_pad = _round_up(hid, 128)
    cout_pad = _round_up(cout, 128)

    # ---- cheap layer-1 pre-application in plain XLA (N x cin x hid) --------
    xm = (x @ params["w1l"]).astype(jnp.bfloat16)                   # messages
    xs = x @ params["w1r"] + params["b1"].reshape(1, hid)           # self+bias

    xm_p = jnp.zeros((n_pad, hid_pad), jnp.bfloat16).at[:n, :hid].set(xm)
    xs_p = jnp.zeros((n_pad, hid_pad), jnp.float32).at[:n, :hid].set(xs)
    w2l = jnp.zeros((hid_pad, cout_pad), jnp.bfloat16).at[:hid, :cout].set(
        params["w2l"].astype(jnp.bfloat16))
    w2r = jnp.zeros((hid_pad, cout_pad), jnp.bfloat16).at[:hid, :cout].set(
        params["w2r"].astype(jnp.bfloat16))
    b2 = jnp.zeros((1, cout_pad), jnp.float32).at[:, :cout].set(
        params["b2"].reshape(1, cout))

    a, inv_deg = build_adjacency(edge_index, n_pad)                 # bf16, f32

    cparams = pltpu.CompilerParams(
        dimension_semantics=("parallel", "arbitrary"),   # rows // 2 TCs on v7x
        vmem_limit_bytes=48 * 1024 * 1024,
    )

    inv_spec = pl.BlockSpec((tile_m, 1), lambda i, k: (i, 0))
    a_spec = pl.BlockSpec((tile_m, tile_k), lambda i, k: (i, k))
    xm_spec = pl.BlockSpec((tile_k, hid_pad), lambda i, k: (k, 0))
    xs_spec = pl.BlockSpec((tile_m, hid_pad), lambda i, k: (i, 0))
    w_spec = pl.BlockSpec((hid_pad, cout_pad), lambda i, k: (0, 0))
    b2_spec = pl.BlockSpec((1, cout_pad), lambda i, k: (0, 0))
    row_out = pl.BlockSpec((tile_m, cout_pad), lambda i, k: (i, 0))
    col_out = pl.BlockSpec((tile_k, cout_pad), lambda i, k: (k, 0))

    # ---- kernel 1: layer-1 aggregation + fused epilogue ---------------------
    flops1 = 2 * n_pad * n_pad * hid_pad + 4 * n_pad * hid_pad * cout_pad
    bytes1 = (n_pad * n_pad * 2 + gi * n_pad * hid_pad * 2
              + n_pad * hid_pad * 4 + n_pad * cout_pad * (2 + 4))
    m2, s2 = pl.pallas_call(
        _sage_layer1_kernel,
        out_shape=(jax.ShapeDtypeStruct((n_pad, cout_pad), jnp.bfloat16),
                   jax.ShapeDtypeStruct((n_pad, cout_pad), jnp.float32)),
        grid_spec=pltpu.PrefetchScalarGridSpec(
            num_scalar_prefetch=0,
            grid=(gi, gk),
            in_specs=[inv_spec, a_spec, xm_spec, xs_spec,
                      w_spec, w_spec, b2_spec],
            out_specs=[row_out, row_out],
            scratch_shapes=[pltpu.VMEM((tile_m, hid_pad), jnp.float32)]),
        compiler_params=cparams,
        cost_estimate=pl.CostEstimate(flops=flops1, transcendentals=0,
                                      bytes_accessed=bytes1),
    )(inv_deg, a, xm_p, xs_p, w2l, w2r, b2)

    # ---- kernel 2: layer-2 aggregation  out = inv_deg * (B @ m2) + s2 -------
    flops2 = 2 * n_pad * n_pad * cout_pad
    bytes2 = (n_pad * n_pad * 2 + gi * n_pad * cout_pad * 2
              + 2 * n_pad * cout_pad * 4)
    out_p = pl.pallas_call(
        _sage_layer2_kernel,
        out_shape=jax.ShapeDtypeStruct((n_pad, cout_pad), jnp.float32),
        grid_spec=pltpu.PrefetchScalarGridSpec(
            num_scalar_prefetch=0,
            grid=(gi, gk),
            in_specs=[inv_spec, a_spec, col_out, row_out],
            out_specs=row_out,
            scratch_shapes=[pltpu.VMEM((tile_m, cout_pad), jnp.float32)]),
        compiler_params=cparams,
        cost_estimate=pl.CostEstimate(flops=flops2, transcendentals=0,
                                      bytes_accessed=bytes2),
    )(inv_deg, a, m2, s2)

    return out_p[:n, :cout]


# --------------------------------------------------------------------------
# params / reference / demo
# --------------------------------------------------------------------------
def init_params(key, in_channels, hidden_channels, out_channels):
    ks = jax.random.split(key, 6)
    s1 = 1.0 / jnp.sqrt(in_channels)
    s2 = 1.0 / jnp.sqrt(hidden_channels)
    return {
        "w1l": jax.random.uniform(ks[0], (in_channels, hidden_channels),
                                  jnp.float32, -s1, s1),
        "w1r": jax.random.uniform(ks[1], (in_channels, hidden_channels),
                                  jnp.float32, -s1, s1),
        "b1": jax.random.uniform(ks[2], (1, hidden_channels),
                                 jnp.float32, -s1, s1),
        "w2l": jax.random.uniform(ks[3], (hidden_channels, out_channels),
                                  jnp.float32, -s2, s2),
        "w2r": jax.random.uniform(ks[4], (hidden_channels, out_channels),
                                  jnp.float32, -s2, s2),
        "b2": jax.random.uniform(ks[5], (1, out_channels),
                                 jnp.float32, -s2, s2),
    }


def graphsage_reference(x, edge_index, params):
    n = x.shape[0]
    src, dst = edge_index[0], edge_index[1]
    a = jnp.zeros((n, n), jnp.float32).at[dst, src].add(1.0)
    a = a / jnp.maximum(a.sum(axis=1, keepdims=True), 1.0)
    h = jnp.maximum((a @ x) @ params["w1l"] + x @ params["w1r"] + params["b1"],
                    0.0)
    return (a @ h) @ params["w2l"] + h @ params["w2r"] + params["b2"]


if __name__ == "__main__":
    key = jax.random.PRNGKey(0)
    k_x, k_p = jax.random.split(key)

    num_nodes, in_channels, hidden_channels, out_channels = 8, 4, 32, 4

    x = jax.random.normal(k_x, (num_nodes, in_channels), jnp.float32)

    # deterministic small graph: a directed ring both ways
    src = jnp.array(list(range(num_nodes)) * 2, jnp.int32)
    dst = jnp.array([(i + 1) % num_nodes for i in range(num_nodes)]
                    + [(i - 1) % num_nodes for i in range(num_nodes)], jnp.int32)
    edge_index = jnp.stack([src, dst], axis=0)

    params = init_params(k_p, in_channels, hidden_channels, out_channels)

    out = graphsage_forward(x, edge_index, params)
    jax.block_until_ready(out)
    assert out.shape == (num_nodes, out_channels)

    ref = graphsage_reference(x, edge_index, params)
    max_err = float(jnp.max(jnp.abs(out - ref)))
    assert jnp.allclose(out, ref, rtol=5e-2, atol=5e-2), max_err

    print("KERNEL_OK")
</pallas_src>

<mosaic_0001>
module attributes {stable_mosaic.version = 11 : i64} {
  func.func @_sage_layer1_kernel(%arg0: i32, %arg1: i32, %arg2: memref<128x1xf32, #tpu.memory_space<vmem>>, %arg3: memref<128x128xbf16, #tpu.memory_space<vmem>>, %arg4: memref<128x128xbf16, #tpu.memory_space<vmem>>, %arg5: memref<128x128xf32, #tpu.memory_space<vmem>>, %arg6: memref<128x128xbf16, #tpu.memory_space<vmem>>, %arg7: memref<128x128xbf16, #tpu.memory_space<vmem>>, %arg8: memref<1x128xf32, #tpu.memory_space<vmem>>, %arg9: memref<128x128xbf16, #tpu.memory_space<vmem>>, %arg10: memref<128x128xf32, #tpu.memory_space<vmem>>, %arg11: memref<128x128xf32, #tpu.memory_space<vmem>>) attributes {dimension_semantics = [#tpu.dimension_semantics<parallel>, #tpu.dimension_semantics<arbitrary>], iteration_bounds = array<i64: 1, 1>, scalar_prefetch = 0 : i64, scratch_operands = 1 : i64, tpu.core_type = #tpu.core_type<tc>, window_params = [{transform_indices = @transform_0, window_bounds = array<i64: 128, 1>}, {transform_indices = @transform_1, window_bounds = array<i64: 128, 128>}, {transform_indices = @transform_2, window_bounds = array<i64: 128, 128>}, {transform_indices = @transform_3, window_bounds = array<i64: 128, 128>}, {pipeline_mode = #tpu.pipeline_mode<synchronous>, transform_indices = @transform_4, window_bounds = array<i64: 128, 128>}, {pipeline_mode = #tpu.pipeline_mode<synchronous>, transform_indices = @transform_5, window_bounds = array<i64: 128, 128>}, {pipeline_mode = #tpu.pipeline_mode<synchronous>, transform_indices = @transform_6, window_bounds = array<i64: 1, 128>}, {transform_indices = @transform_7, window_bounds = array<i64: 128, 128>}, {transform_indices = @transform_8, window_bounds = array<i64: 128, 128>}]} {
    %c0_i32 = arith.constant 0 : i32
    %0 = arith.cmpi eq, %arg1, %c0_i32 : i32
    %1 = arith.extui %0 : i1 to i32
    %c0_i32_0 = arith.constant 0 : i32
    %2 = arith.cmpi ne, %1, %c0_i32_0 : i32
    scf.if %2 {
      %cst_10 = arith.constant 0.000000e+00 : f32
      %12 = vector.broadcast %cst_10 : f32 to vector<128x128xf32>
      %c0_11 = arith.constant 0 : index
      %c0_12 = arith.constant 0 : index
      %13 = vector.load %arg11[%c0_11, %c0_12] : memref<128x128xf32, #tpu.memory_space<vmem>>, vector<128x128xf32>
      tpu.vector_store %arg11[%c0_11, %c0_12], %12 {strides = array<i32>} : memref<128x128xf32, #tpu.memory_space<vmem>>, vector<128x128xf32>,
    } else {
    }
    %c0 = arith.constant 0 : index
    %c0_1 = arith.constant 0 : index
    %3 = vector.load %arg11[%c0, %c0_1] : memref<128x128xf32, #tpu.memory_space<vmem>>, vector<128x128xf32>
    %c0_2 = arith.constant 0 : index
    %c0_3 = arith.constant 0 : index
    %4 = vector.load %arg3[%c0_2, %c0_3] : memref<128x128xbf16, #tpu.memory_space<vmem>>, vector<128x128xbf16>
    %c0_4 = arith.constant 0 : index
    %c0_5 = arith.constant 0 : index
    %5 = vector.load %arg4[%c0_4, %c0_5] : memref<128x128xbf16, #tpu.memory_space<vmem>>, vector<128x128xbf16>
    %cst = arith.constant dense<0.000000e+00> : vector<128x128xf32>
    %6 = tpu.matmul %4, %5, %cst {dimension_numbers = #tpu.dot_dimension_numbers<[1], [0], [0], [1], [0, 0, 1, 1], [], []>} : vector<128x128xbf16>, vector<128x128xbf16>, vector<128x128xf32> -> vector<128x128xf32>
    %7 = arith.addf %3, %6 : vector<128x128xf32>
    %c0_6 = arith.constant 0 : index
    %c0_7 = arith.constant 0 : index
    %8 = vector.load %arg11[%c0_6, %c0_7] : memref<128x128xf32, #tpu.memory_space<vmem>>, vector<128x128xf32>
    tpu.vector_store %arg11[%c0_6, %c0_7], %7 {strides = array<i32>} : memref<128x128xf32, #tpu.memory_space<vmem>>, vector<128x128xf32>,
    %c0_i32_8 = arith.constant 0 : i32
    %9 = arith.cmpi eq, %arg1, %c0_i32_8 : i32
    %10 = arith.extui %9 : i1 to i32
    %c0_i32_9 = arith.constant 0 : i32
    %11 = arith.cmpi ne, %10, %c0_i32_9 : i32
    scf.if %11 {
      %c0_10 = arith.constant 0 : index
      %c0_11 = arith.constant 0 : index
      %12 = vector.load %arg2[%c0_10, %c0_11] : memref<128x1xf32, #tpu.memory_space<vmem>>, vector<128x1xf32>
      %c0_12 = arith.constant 0 : index
      %c0_13 = arith.constant 0 : index
      %13 = vector.load %arg11[%c0_12, %c0_13] : memref<128x128xf32, #tpu.memory_space<vmem>>, vector<128x128xf32>
      %14 = vector.broadcast %12 : vector<128x1xf32> to vector<128x128xf32>
      %15 = arith.mulf %14, %13 : vector<128x128xf32>
      %c0_14 = arith.constant 0 : index
      %c0_15 = arith.constant 0 : index
      %16 = vector.load %arg5[%c0_14, %c0_15] : memref<128x128xf32, #tpu.memory_space<vmem>>, vector<128x128xf32>
      %17 = arith.addf %15, %16 : vector<128x128xf32>
      %cst_16 = arith.constant 0.000000e+00 : f32
      %18 = vector.broadcast %cst_16 : f32 to vector<128x128xf32>
      %19 = arith.maximumf %17, %18 : vector<128x128xf32>
      %20 = arith.truncf %19 : vector<128x128xf32> to vector<128x128xbf16>
      %c0_17 = arith.constant 0 : index
      %c0_18 = arith.constant 0 : index
      %21 = vector.load %arg6[%c0_17, %c0_18] : memref<128x128xbf16, #tpu.memory_space<vmem>>, vector<128x128xbf16>
      %cst_19 = arith.constant dense<0.000000e+00> : vector<128x128xf32>
      %22 = tpu.matmul %20, %21, %cst_19 {dimension_numbers = #tpu.dot_dimension_numbers<[1], [0], [0], [1], [0, 0, 1, 1], [], []>} : vector<128x128xbf16>, vector<128x128xbf16>, vector<128x128xf32> -> vector<128x128xf32>
      %23 = arith.truncf %22 : vector<128x128xf32> to vector<128x128xbf16>
      %c0_20 = arith.constant 0 : index
      %c0_21 = arith.constant 0 : index
      %24 = vector.load %arg9[%c0_20, %c0_21] : memref<128x128xbf16, #tpu.memory_space<vmem>>, vector<128x128xbf16>
      tpu.vector_store %arg9[%c0_20, %c0_21], %23 {strides = array<i32>} : memref<128x128xbf16, #tpu.memory_space<vmem>>, vector<128x128xbf16>,
      %c0_22 = arith.constant 0 : index
      %c0_23 = arith.constant 0 : index
      %25 = vector.load %arg7[%c0_22, %c0_23] : memref<128x128xbf16, #tpu.memory_space<vmem>>, vector<128x128xbf16>
      %cst_24 = arith.constant dense<0.000000e+00> : vector<128x128xf32>
      %26 = tpu.matmul %20, %25, %cst_24 {dimension_numbers = #tpu.dot_dimension_numbers<[1], [0], [0], [1], [0, 0, 1, 1], [], []>} : vector<128x128xbf16>, vector<128x128xbf16>, vector<128x128xf32> -> vector<128x128xf32>
      %c0_25 = arith.constant 0 : index
      %c0_26 = arith.constant 0 : index
      %27 = vector.load %arg8[%c0_25, %c0_26] : memref<1x128xf32, #tpu.memory_space<vmem>>, vector<1x128xf32>
      %28 = vector.broadcast %27 : vector<1x128xf32> to vector<128x128xf32>
      %29 = arith.addf %26, %28 : vector<128x128xf32>
      %c0_27 = arith.constant 0 : index
      %c0_28 = arith.constant 0 : index
      %30 = vector.load %arg10[%c0_27, %c0_28] : memref<128x128xf32, #tpu.memory_space<vmem>>, vector<128x128xf32>
      tpu.vector_store %arg10[%c0_27, %c0_28], %29 {strides = array<i32>} : memref<128x128xf32, #tpu.memory_space<vmem>>, vector<128x128xf32>,
    } else {
    }
    return
  }
  func.func @transform_0(%arg0: i32, %arg1: i32) -> (i32, i32) {
    %c0_i32 = arith.constant 0 : i32
    %c0_i32_0 = arith.constant 0 : i32
    return %arg0, %c0_i32 : i32, i32
  }
  func.func @transform_1(%arg0: i32, %arg1: i32) -> (i32, i32) {
    %c0_i32 = arith.constant 0 : i32
    return %arg0, %arg1 : i32, i32
  }
  func.func @transform_2(%arg0: i32, %arg1: i32) -> (i32, i32) {
    %c0_i32 = arith.constant 0 : i32
    %c0_i32_0 = arith.constant 0 : i32
    return %arg1, %c0_i32 : i32, i32
  }
  func.func @transform_3(%arg0: i32, %arg1: i32) -> (i32, i32) {
    %c0_i32 = arith.constant 0 : i32
    %c0_i32_0 = arith.constant 0 : i32
    return %arg0, %c0_i32 : i32, i32
  }
  func.func @transform_4(%arg0: i32, %arg1: i32) -> (i32, i32) {
    %c0_i32 = arith.constant 0 : i32
    %c0_i32_0 = arith.constant 0 : i32
    %c0_i32_1 = arith.constant 0 : i32
    return %c0_i32, %c0_i32_0 : i32, i32
  }
  func.func @transform_5(%arg0: i32, %arg1: i32) -> (i32, i32) {
    %c0_i32 = arith.constant 0 : i32
    %c0_i32_0 = arith.constant 0 : i32
    %c0_i32_1 = arith.constant 0 : i32
    return %c0_i32, %c0_i32_0 : i32, i32
  }
  func.func @transform_6(%arg0: i32, %arg1: i32) -> (i32, i32) {
    %c0_i32 = arith.constant 0 : i32
    %c0_i32_0 = arith.constant 0 : i32
    %c0_i32_1 = arith.constant 0 : i32
    return %c0_i32, %c0_i32_0 : i32, i32
  }
  func.func @transform_7(%arg0: i32, %arg1: i32) -> (i32, i32) {
    %c0_i32 = arith.constant 0 : i32
    %c0_i32_0 = arith.constant 0 : i32
    return %arg0, %c0_i32 : i32, i32
  }
  func.func @transform_8(%arg0: i32, %arg1: i32) -> (i32, i32) {
    %c0_i32 = arith.constant 0 : i32
    %c0_i32_0 = arith.constant 0 : i32
    return %arg0, %c0_i32 : i32, i32
  }
}

</mosaic_0001>

<bundles_post_ra>
// kernel: tpu_custom_call.1
= control target key start
LH: loop header
LB: loop body
LE: loop exit
PB: predicated region body
PF: predicated region fallthrough
CT: control target
= control target key end

     0   :  { %14 = vsyncpa [#allocation4], 0  ;;  %s1807_s0 = inlined_call_operand.vmem [shape: f32[128,1], index: 0, kind: input, shape index: {}]   ;;  %s1808_s1 = inlined_call_operand.hbm [shape: bf16[128,128], index: 1, kind: input, shape index: {}]   ;;  %s1809_s2 = inlined_call_operand.hbm [shape: bf16[128,128], index: 2, kind: input, shape index: {}]   ;;  %s1810_s3 = inlined_call_operand.vmem [shape: f32[128,128], index: 3, kind: input, shape index: {}]   ;;  %s1811_s4 = inlined_call_operand.hbm [shape: bf16[128,128], index: 4, kind: input, shape index: {}]   ;;  %s1812_s5 = inlined_call_operand.hbm [shape: bf16[128,128], index: 5, kind: input, shape index: {}]   ;;  %s1813_s6 = inlined_call_operand.vmem [shape: f32[1,128], index: 6, kind: input, shape index: {}]   ;;  %s1814_s7 = inlined_call_operand.hbm [shape: bf16[128,128], index: 7, kind: output, shape index: {0}]   ;;  %s1815_s8 = inlined_call_operand.hbm [shape: f32[128,128], index: 8, kind: output, shape index: {1}]  }
   0x1   :  { %15 = vsyncpa [#allocation7], 0 }
   0x2   :  { %16 = vsyncpa [#allocation10], 0 }
   0x3   :  { %17 = vsyncpa [#allocation5], 0 }
   0x4   :  { %18 = vsyncpa [#allocation13], 0  ;;  %s1485_s27 = smov [#allocation6]   ;;  %s1486_s29 = smov [#allocation3]  }
   0x5   :  { %s38_s28 = sshll.u32 %s1485_s27, 4  ;;  %s26_s30 = sshll.u32 %s1486_s29, 4  ;;  %s39_s28 = int_to_ptr.vmem [resolvable:$true] %s38_s28  ;;  %s1541_s30 = int_to_ptr.vmem [resolvable:$true] %s26_s30 }
   0x6   :  { %s1343_s11 = scalar_lea.hbm %s1809_s2, 1024 }
   0x7   :  { %p1344_p0 = scmp.ne.s32.totalorder %s1809_s2, %s1343_s11  ;;  %p1347_p1 = scmp.lt.u32.totalorder %s1343_s11, %s1809_s2 }
   0x9   :  { %p1349_p2 = pnand %p1347_p1, %p1344_p0 }
   0xb   :  { %1352 = shalt.err (!%p1349_p2)
}
   0xc   :  { %s1353_s16 = scalar_lea.vmem %s39_s28, 1024  ;;  %p1358_p4 = scmp.lt.s32.totalorder %s39_s28, %s39_s28 }
   0xd   :  { %p1354_p3 = scmp.ne.s32.totalorder %s39_s28, %s1353_s16  ;;  %p1359_p5 = scmp.lt.s32.totalorder %s1353_s16, %s1353_s16 }
   0xf   :  { %p1360_p6 = por %p1359_p5, %p1358_p4 }
  0x11   :  { %p1361_p7 = pnand %p1360_p6, %p1354_p3 }
  0x13   :  { %1364 = shalt.err (!%p1361_p7)
}
  0x14   :  { %s1487_s17 = smov 64   ;;  %s1488_s18 = smov 4  }
  0x15   :  { %44 = dma.hbm_to_vmem [thread:$0]  %s1809_s2, 1024, %s39_s28, [#allocation7], %s1487_s17, %s1487_s17, %s1488_s18  }
  0x16   :  { %s1365_s23 = scalar_lea.hbm %s1808_s1, 1024 }
  0x17   :  { %p1366_p8 = scmp.ne.s32.totalorder %s1808_s1, %s1365_s23  ;;  %p1369_p9 = scmp.lt.u32.totalorder %s1365_s23, %s1808_s1 }
  0x19   :  { %p1371_p10 = pnand %p1369_p9, %p1366_p8 }
  0x1b   :  { %1374 = shalt.err (!%p1371_p10)
}
  0x1c   :  { %s1375_s29 = scalar_lea.vmem %s1541_s30, 1024  ;;  %p1380_p12 = scmp.lt.s32.totalorder %s1541_s30, %s1541_s30 }
  0x1d   :  { %p1376_p11 = scmp.ne.s32.totalorder %s1541_s30, %s1375_s29  ;;  %p1381_p13 = scmp.lt.s32.totalorder %s1375_s29, %s1375_s29 }
  0x1f   :  { %p1382_p0 = por %p1381_p13, %p1380_p12 }
  0x21   :  { %p1383_p1 = pnand %p1382_p0, %p1376_p11 }
  0x23   :  { %1386 = shalt.err (!%p1383_p1)
}
  0x24   :  { %32 = dma.hbm_to_vmem [thread:$0]  %s1808_s1, 1024, %s1541_s30, [#allocation4], %s1487_s17, %s1487_s17, %s1488_s18  }
  0x25   :  { %s1489_s9 = smov [#allocation8]   ;;  %s1490_s11 = smov [#allocation9]  }
  0x26   :  { %s52_s10 = sshll.u32 %s1489_s9, 4  ;;  %s64_s12 = sshll.u32 %s1490_s11, 4  ;;  %s53_s10 = int_to_ptr.vmem [resolvable:$true] %s52_s10  ;;  %s1578_s12 = int_to_ptr.vmem [resolvable:$true] %s64_s12 }
  0x27   :  { %s1387_s15 = scalar_lea.hbm %s1811_s4, 1024 }
  0x28   :  { %p1388_p2 = scmp.ne.s32.totalorder %s1811_s4, %s1387_s15  ;;  %p1391_p3 = scmp.lt.u32.totalorder %s1387_s15, %s1811_s4 }
  0x2a   :  { %p1393_p4 = pnand %p1391_p3, %p1388_p2 }
  0x2c   :  { %1396 = shalt.err (!%p1393_p4)
}
  0x2d   :  { %s1397_s1 = scalar_lea.vmem %s53_s10, 1024  ;;  %p1402_p6 = scmp.lt.s32.totalorder %s53_s10, %s53_s10 }
  0x2e   :  { %p1398_p5 = scmp.ne.s32.totalorder %s53_s10, %s1397_s1  ;;  %p1403_p7 = scmp.lt.s32.totalorder %s1397_s1, %s1397_s1 }
  0x30   :  { %p1404_p8 = por %p1403_p7, %p1402_p6 }
  0x32   :  { %p1405_p9 = pnand %p1404_p8, %p1398_p5 }
  0x34   :  { %1408 = shalt.err (!%p1405_p9)
}
  0x35   :  { %58 = dma.hbm_to_vmem [thread:$0]  %s1811_s4, 1024, %s53_s10, [#allocation7], %s1487_s17, %s1487_s17, %s1488_s18  }
  0x36   :  { %s1409_s25 = scalar_lea.hbm %s1812_s5, 1024 }
  0x37   :  { %p1410_p10 = scmp.ne.s32.totalorder %s1812_s5, %s1409_s25  ;;  %p1413_p11 = scmp.lt.u32.totalorder %s1409_s25, %s1812_s5 }
  0x39   :  { %p1415_p12 = pnand %p1413_p11, %p1410_p10 }
  0x3b   :  { %1418 = shalt.err (!%p1415_p12)
}
  0x3c   :  { %s1419_s28 = scalar_lea.vmem %s1578_s12, 1024  ;;  %p1424_p0 = scmp.lt.s32.totalorder %s1578_s12, %s1578_s12 }
  0x3d   :  { %p1420_p13 = scmp.ne.s32.totalorder %s1578_s12, %s1419_s28  ;;  %p1425_p1 = scmp.lt.s32.totalorder %s1419_s28, %s1419_s28 }
  0x3f   :  { %p1426_p2 = por %p1425_p1, %p1424_p0 }
  0x41   :  { %p1427_p3 = pnand %p1426_p2, %p1420_p13 }
  0x43   :  { %1430 = shalt.err (!%p1427_p3)
}
  0x44   :  { %70 = dma.hbm_to_vmem [thread:$0]  %s1812_s5, 1024, %s1578_s12, [#allocation10], %s1487_s17, %s1487_s17, %s1488_s18  }
  0x45   :  { %1475 = dma.done.wait [#allocation4], 1024  }
  0x46   :  { %1476 = vsyncadd [#allocation4], 4294966272 }
  0x47   :  { %1477 = dma.done.wait [#allocation7], 2048  }
  0x48   :  { %1478 = vsyncadd [#allocation7], 4294965248 }
  0x49   :  { %1479 = dma.done.wait [#allocation10], 1024  }
  0x4a   :  { %1480 = vsyncadd [#allocation10], 4294966272  ;;  %v1491_v0 = vmov 0   ;;  %v1311_v1 = vld [vmem:[#allocation6] sm:$0xff]   ;;  %v1312_v2 = vld [vmem:[#allocation6 + $0x8] sm:$0xff]  }
  0x4b   :  { %1309 = vset.pattern.permute.xlu0 %v1491_v0  ;;  %1310 = vset.pattern.permute.xlu1 %v1491_v0  ;;  %v1313_v3 = vld [vmem:[#allocation6 + $0x10] sm:$0xff]   ;;  %v1314_v4 = vld [vmem:[#allocation6 + $0x18] sm:$0xff]   ;;  %v1319_v5 = vld [vmem:[#allocation3] sm:$0xff]  }
  0x4c   :  { %1186 = vmatprep.subr.bf16.mxu0 %v1311_v1  ;;  %1202 = vmatprep.mubr.bf16.mxu0 %v1319_v5  ;;  %v1315_v6 = vld [vmem:[#allocation6 + $0x20] sm:$0xff]   ;;  %v1316_v7 = vld [vmem:[#allocation6 + $0x28] sm:$0xff]   ;;  %v384_v9 = vld [vmem:[%s1807_s0 + $0x10] sm:$0xff] }
  0x4d   :  { %1187 = vmatpush3.bf16.msra.mxu0 %v1311_v1  ;;  %v382_v8 = vld [vmem:[%s1807_s0] sm:$0xff]  ;;  %426 = vperm.xlu1 %1310, %v384_v9   ;;  %v383_v10 = vld [vmem:[%s1807_s0 + $0x8] sm:$0xff]  ;;  %v385_v11 = vld [vmem:[%s1807_s0 + $0x18] sm:$0xff] }
  0x4e   :  { %1188 = vmatprep.subr.bf16.mxu0 %v1312_v2  ;;  %416 = vperm.xlu0 %1309, %v382_v8   ;;  %v1317_v12 = vld [vmem:[#allocation6 + $0x30] sm:$0xff]   ;;  %v386_v13 = vld [vmem:[%s1807_s0 + $0x20] sm:$0xff]  ;;  %v387_v14 = vld [vmem:[%s1807_s0 + $0x28] sm:$0xff] }
  0x4f   :  { %v1318_v15 = vld [vmem:[#allocation6 + $0x38] sm:$0xff]   ;;  %v388_v16 = vld [vmem:[%s1807_s0 + $0x30] sm:$0xff]  ;;  %v1327_v18 = vld [vmem:[#allocation8] sm:$0xff]  }
  0x50   :  { %v389_v17 = vld [vmem:[%s1807_s0 + $0x38] sm:$0xff]  ;;  %1218 = vmatprep.subr.bf16.mxu1 %v1327_v18  ;;  %v1320_v19 = vld [vmem:[#allocation3 + $0x8] sm:$0xff]   ;;  %v390_v20 = vld [vmem:[%s1807_s0 + $0x40] sm:$0xff] }
  0x51   :  { %1189 = vmatpush3.bf16.msra.mxu0 %v1312_v2  ;;  %431 = vperm.xlu1 %1310, %v385_v11   ;;  %v391_v21 = vld [vmem:[%s1807_s0 + $0x48] sm:$0xff]  ;;  %v1645_v22 = vld [vmem:[#allocation9] sm:$0xff]   ;;  %v1321_v24 = vld [vmem:[#allocation3 + $0x10] sm:$0xff]  }
  0x52   :  { %1190 = vmatprep.subr.bf16.mxu0 %v1313_v3  ;;  %421 = vperm.xlu0 %1309, %v383_v10   ;;  %v1329_v23 = vld [vmem:[#allocation8 + $0x8] sm:$0xff]   ;;  %v1331_v26 = vld [vmem:[#allocation8 + $0x10] sm:$0xff]   ;;  %v393_v28 = vld [vmem:[%s1807_s0 + $0x58] sm:$0xff] }
  0x53   :  { %1219 = vmatpush3.bf16.msra.mxu1 %v1327_v18  ;;  %v1648_v25 = vld [vmem:[#allocation9 + $0x8] sm:$0xff]   ;;  %v392_v27 = vld [vmem:[%s1807_s0 + $0x50] sm:$0xff]  ;;  %v1333_v30 = vld [vmem:[#allocation8 + $0x18] sm:$0xff]  }
  0x54   :  { %1220 = vmatprep.subr.bf16.mxu1 %v1329_v23  ;;  %v1658_v29 = vld [vmem:[#allocation9 + $0x10] sm:$0xff]   ;;  %v1322_v31 = vld [vmem:[#allocation3 + $0x18] sm:$0xff]   ;;  %v394_v32 = vld [vmem:[%s1807_s0 + $0x60] sm:$0xff] }
  0x55   :  { %1191 = vmatpush3.bf16.msra.mxu0 %v1313_v3  ;;  %441 = vperm.xlu1 %1310, %v387_v14   ;;  %v395_v33 = vld [vmem:[%s1807_s0 + $0x68] sm:$0xff]  ;;  %v1323_v34 = vld [vmem:[#allocation3 + $0x20] sm:$0xff]   ;;  %v1668_v35 = vld [vmem:[#allocation9 + $0x18] sm:$0xff]  }
  0x56   :  { %1192 = vmatprep.subr.bf16.mxu0 %v1314_v4  ;;  %436 = vperm.xlu0 %1309, %v386_v13   ;;  %v1335_v36 = vld [vmem:[#allocation8 + $0x20] sm:$0xff]   ;;  %v396_v37 = vld [vmem:[%s1807_s0 + $0x70] sm:$0xff]  ;;  %v397_v38 = vld [vmem:[%s1807_s0 + $0x78] sm:$0xff] }
  0x57   :  { %1221 = vmatpush3.bf16.msra.mxu1 %v1329_v23  ;;  %v1678_v39 = vld [vmem:[#allocation9 + $0x20] sm:$0xff]   ;;  %v1337_v40 = vld [vmem:[#allocation8 + $0x28] sm:$0xff]   ;;  %v1325_v42 = vld [vmem:[#allocation3 + $0x30] sm:$0xff]  }
  0x58   :  { %1222 = vmatprep.subr.bf16.mxu1 %v1331_v26  ;;  %v1324_v41 = vld [vmem:[#allocation3 + $0x28] sm:$0xff]   ;;  %v1326_v43 = vld [vmem:[#allocation3 + $0x38] sm:$0xff]   ;;  %v1339_v45 = vld [vmem:[#allocation8 + $0x30] sm:$0xff]  }
  0x59   :  { %1193 = vmatpush3.bf16.msra.mxu0 %v1314_v4  ;;  %451 = vperm.xlu1 %1310, %v389_v17   ;;  %v1683_v44 = vld [vmem:[#allocation9 + $0x28] sm:$0xff]   ;;  %v1687_v46 = vld [vmem:[#allocation9 + $0x30] sm:$0xff]   ;;  %v1341_v47 = vld [vmem:[#allocation8 + $0x38] sm:$0xff]  }
  0x5a   :  { %1194 = vmatprep.subr.bf16.mxu0 %v1315_v6  ;;  %446 = vperm.xlu0 %1309, %v388_v16   ;;  %v1691_v48 = vld [vmem:[#allocation9 + $0x38] sm:$0xff]   ;;  %v512_v57 = vld [vmem:[%s1810_s3 + $0x10] sm:$0xff]  ;;  %v510_v60 = vld [vmem:[%s1810_s3] sm:$0xff] }
  0x5b   :  { %1223 = vmatpush3.bf16.msra.mxu1 %v1331_v26  ;;  %v513_v0 = vld [vmem:[%s1810_s3 + $0x18] sm:$0xff]  ;;  %v511_v4 = vld [vmem:[%s1810_s3 + $0x8] sm:$0xff]  ;;  %v516_v16 = vld [vmem:[%s1810_s3 + $0x30] sm:$0xff] }
  0x5c   :  { %1224 = vmatprep.subr.bf16.mxu1 %v1333_v30 }
  0x5d   :  { %1195 = vmatpush3.bf16.msra.mxu0 %v1315_v6  ;;  %461 = vperm.xlu1 %1310, %v391_v21  }
  0x5e   :  { %1196 = vmatprep.subr.bf16.mxu0 %v1316_v7  ;;  %456 = vperm.xlu0 %1309, %v390_v20  }
  0x5f   :  { %1225 = vmatpush3.bf16.msra.mxu1 %v1333_v30 }
  0x60   :  { %1226 = vmatprep.subr.bf16.mxu1 %v1335_v36 }
  0x61   :  { %1197 = vmatpush3.bf16.msra.mxu0 %v1316_v7  ;;  %471 = vperm.xlu1 %1310, %v393_v28  }
  0x62   :  { %1198 = vmatprep.subr.bf16.mxu0 %v1317_v12  ;;  %466 = vperm.xlu0 %1309, %v392_v27  }
  0x63   :  { %1227 = vmatpush3.bf16.msra.mxu1 %v1335_v36 }
  0x64   :  { %1228 = vmatprep.subr.bf16.mxu1 %v1337_v40 }
  0x65   :  { %1199 = vmatpush3.bf16.msra.mxu0 %v1317_v12  ;;  %481 = vperm.xlu1 %1310, %v395_v33  }
  0x66   :  { %1200 = vmatprep.subr.bf16.mxu0 %v1318_v15  ;;  %476 = vperm.xlu0 %1309, %v394_v32  }
  0x67   :  { %1229 = vmatpush3.bf16.msra.mxu1 %v1337_v40 }
  0x68   :  { %1230 = vmatprep.subr.bf16.mxu1 %v1339_v45 }
  0x69   :  { %1201 = vmatpush3.bf16.msra.mxu0 %v1318_v15  ;;  %491 = vperm.xlu1 %1310, %v397_v38  }
  0x6a   :  { %1250 = vmatprep.subr.bf16.mxu0 %v1645_v22  ;;  %486 = vperm.xlu0 %1309, %v396_v37  }
  0x6b   :  { %1231 = vmatpush3.bf16.msra.mxu1 %v1339_v45 }
  0x6c   :  { %1203 = vmatmul.mubr.bf16.vlgmr.msra.gmra.mrb[0].mxu0 %v1320_v19  ;;  %1232 = vmatprep.subr.bf16.mxu1 %v1341_v47  ;;  %v514_v19 = vld [vmem:[%s1810_s3 + $0x20] sm:$0xff] }
  0x6d   :  { %1206 = vmatprep.mubr.bf16.mxu0 %v1321_v24  ;;  %1251 = vmatpush3.bf16.msra.mxu0 %v1645_v22  ;;  %v517_v24 = vld [vmem:[%s1810_s3 + $0x38] sm:$0xff] }
  0x6e   :  { %1252 = vmatprep.subr.bf16.mxu0 %v1648_v25 }
  0x6f   :  { %1233 = vmatpush3.bf16.msra.mxu1 %v1341_v47  ;;  %v520_v47 = vld [vmem:[%s1810_s3 + $0x50] sm:$0xff] }
  0x70   :  { %1282 = vmatprep.subr.bf16.mxu1 %v1645_v22 }
  0x71   :  { %1253 = vmatpush3.bf16.msra.mxu0 %v1648_v25 }
  0x72   :  { %1254 = vmatprep.subr.bf16.mxu0 %v1658_v29 }
  0x74   :  { %1207 = vmatmul.mubr.bf16.gmra.mrb[4].mxu0 %v1322_v31  ;;  %v515_v31 = vld [vmem:[%s1810_s3 + $0x28] sm:$0xff] }
  0x75   :  { %1210 = vmatprep.mubr.bf16.mxu0 %v1323_v34  ;;  %1255 = vmatpush3.bf16.msra.mxu0 %v1658_v29 }
  0x76   :  { %1256 = vmatprep.subr.bf16.mxu0 %v1668_v35 }
  0x79   :  { %1257 = vmatpush3.bf16.msra.mxu0 %v1668_v35 }
  0x7a   :  { %1258 = vmatprep.subr.bf16.mxu0 %v1678_v39 }
  0x7c   :  { %1211 = vmatmul.mubr.bf16.gmra.mrb[8].mxu0 %v1324_v41 }
  0x7d   :  { %1214 = vmatprep.mubr.bf16.mxu0 %v1325_v42  ;;  %1259 = vmatpush3.bf16.msra.mxu0 %v1678_v39 }
  0x7e   :  { %1260 = vmatprep.subr.bf16.mxu0 %v1683_v44 }
  0x81   :  { %1261 = vmatpush3.bf16.msra.mxu0 %v1683_v44 }
  0x82   :  { %1262 = vmatprep.subr.bf16.mxu0 %v1687_v46 }
  0x84   :  { %1215 = vmatmul.mubr.bf16.gmra.mrb[12].mxu0 %v1326_v43 }
  0x85   :  { %1263 = vmatpush3.bf16.msra.mxu0 %v1687_v46 }
  0x86   :  { %1264 = vmatprep.subr.bf16.mxu0 %v1691_v48 }
  0x89   :  { %1265 = vmatpush3.bf16.msra.mxu0 %v1691_v48 }
  0xcc   :  { %v427_v50 = vpop.permute.xlu1 %426 }
  0xcd   :  { %v417_v49 = vpop.permute.xlu0 %416 }
  0xd0   :  { %v432_v52 = vpop.permute.xlu1 %431 }
  0xd1   :  { %v422_v51 = vpop.permute.xlu0 %421 }
  0xd4   :  { %v442_v54 = vpop.permute.xlu1 %441 }
  0xd5   :  { %v437_v53 = vpop.permute.xlu0 %436 }
  0xd8   :  { %v452_v61 = vpop.permute.xlu1 %451 }
  0xd9   :  { %v447_v55 = vpop.permute.xlu0 %446 }
  0xdc   :  { %v462_v12 = vpop.permute.xlu1 %461 }
  0xdd   :  { %v457_v8 = vpop.permute.xlu0 %456 }
  0xe0   :  { %v472_v37 = vpop.permute.xlu1 %471 }
  0xe1   :  { %v467_v32 = vpop.permute.xlu0 %466 }
 0x13f   :  { %v1204_v56 = vpop.f32.mrb[0].mxu0 }
 0x140   :  { %v496_v58 = vmul.f32 %v1204_v56, %v427_v50  ;;  %v284_v59 = vpop.f32.mrb[1].mxu0 }
 0x141   :  { %v494_v62 = vmul.f32 %v417_v49, %v284_v59  ;;  %v1205_v63 = vpop.f32.mrb[2].mxu0 }
 0x142   :  { %v528_v1 = vadd.f32 %v512_v57, %v496_v58  ;;  %v497_v2 = vmul.f32 %v1205_v63, %v432_v52  ;;  %v287_v3 = vpop.f32.mrb[3].mxu0 }
 0x143   :  { %v526_v5 = vadd.f32 %v510_v60, %v494_v62  ;;  %v495_v6 = vmul.f32 %v422_v51, %v287_v3  ;;  %v518_v51 = vld [vmem:[%s1810_s3 + $0x40] sm:$0xff]  ;;  %v519_v60 = vld [vmem:[%s1810_s3 + $0x48] sm:$0xff] }
 0x144   :  { %v529_v7 = vadd.f32 %v513_v0, %v497_v2  ;;  %v544_v10 = vmax.f32 %v528_v1, 0.0 }
 0x145   :  { %v527_v9 = vadd.f32 %v511_v4, %v495_v6  ;;  %v542_v13 = vmax.f32 %v526_v5, 0.0 }
 0x146   :  { %v545_v11 = vmax.f32 %v529_v7, 0.0  ;;  %v524_v7 = vld [vmem:[%s1810_s3 + $0x70] sm:$0xff] }
 0x147   :  { %v543_v14 = vmax.f32 %v527_v9, 0.0  ;;  %v1208_v15 = vpop.f32.mrb[4].mxu0 }
 0x148   :  { %v500_v17 = vmul.f32 %v1208_v15, %v447_v55  ;;  %v300_v18 = vpop.f32.mrb[5].mxu0  ;;  %v559_v20 = vpack.c.bf16 %v545_v11, %v544_v10  ;;  %v521_v55 = vld [vmem:[%s1810_s3 + $0x58] sm:$0xff]  ;;  %v522_v10 = vld [vmem:[%s1810_s3 + $0x60] sm:$0xff] }
 0x149   :  { %v498_v21 = vmul.f32 %v437_v53, %v300_v18  ;;  %v1209_v23 = vpop.f32.mrb[6].mxu0  ;;  %v558_v26 = vpack.c.bf16 %v543_v14, %v542_v13  ;;  %v477_v53 = vpop.permute.xlu0 %476  ;;  %v525_v14 = vld [vmem:[%s1810_s3 + $0x78] sm:$0xff] }
 0x14a   :  { %v532_v27 = vadd.f32 %v516_v16, %v500_v17  ;;  %v501_v28 = vmul.f32 %v1209_v23, %v452_v61  ;;  %v303_v30 = vpop.f32.mrb[7].mxu0  ;;  %v482_v61 = vpop.permute.xlu1 %481 }
 0x14b   :  { %v530_v33 = vadd.f32 %v514_v19, %v498_v21  ;;  %v499_v34 = vmul.f32 %v442_v54, %v303_v30  ;;  %1234 = vmatprep.mubr.bf16.mxu1 %v558_v26  ;;  %1266 = vmatprep.mubr.bf16.mxu0 %v558_v26  ;;  %v523_v19 = vld [vmem:[%s1810_s3 + $0x68] sm:$0xff] }
 0x14c   :  { %v533_v36 = vadd.f32 %v517_v24, %v501_v28  ;;  %1235 = vmatmul.mubr.bf16.vlgmr.msra.gmra.mrb[0].mxu1 %v559_v20  ;;  %1267 = vmatmul.mubr.bf16.vlgmr.msra.gmra.mrb[16].mxu0 %v559_v20  ;;  %v548_v40 = vmax.f32 %v532_v27, 0.0 }
 0x14d   :  { %v531_v38 = vadd.f32 %v515_v31, %v499_v34  ;;  %1290 = vmatpush3.bf16.msra.mxu1 %v1645_v22  ;;  %v546_v42 = vmax.f32 %v530_v33, 0.0  ;;  %v487_v3 = vpop.permute.xlu0 %486 }
 0x14e   :  { %v549_v41 = vmax.f32 %v533_v36, 0.0  ;;  %1283 = vmatprep.subr.bf16.mxu1 %v1648_v25 }
 0x14f   :  { %v547_v43 = vmax.f32 %v531_v38, 0.0  ;;  %v1212_v45 = vpop.f32.mrb[8].mxu0 }
 0x150   :  { %v504_v49 = vmul.f32 %v1212_v45, %v467_v32  ;;  %v316_v50 = vpop.f32.mrb[9].mxu0  ;;  %v561_v52 = vpack.c.bf16 %v549_v41, %v548_v40 }
 0x151   :  { %v502_v22 = vmul.f32 %v457_v8, %v316_v50  ;;  %1291 = vmatpush3.bf16.msra.mxu1 %v1648_v25  ;;  %v1213_v54 = vpop.f32.mrb[10].mxu0  ;;  %v560_v56 = vpack.c.bf16 %v547_v43, %v546_v42 }
 0x152   :  { %v536_v57 = vadd.f32 %v520_v47, %v504_v49  ;;  %v505_v58 = vmul.f32 %v1213_v54, %v472_v37  ;;  %v319_v59 = vpop.f32.mrb[11].mxu0  ;;  %1284 = vmatprep.subr.bf16.mxu1 %v1658_v29 }
 0x153   :  { %v534_v62 = vadd.f32 %v518_v51, %v502_v22  ;;  %v503_v63 = vmul.f32 %v462_v12, %v319_v59  ;;  %1238 = vmatprep.mubr.bf16.mxu1 %v560_v56  ;;  %1270 = vmatprep.mubr.bf16.mxu0 %v560_v56 }
 0x154   :  { %v537_v25 = vadd.f32 %v521_v55, %v505_v58  ;;  %1239 = vmatmul.mubr.bf16.gmra.mrb[4].mxu1 %v561_v52  ;;  %1271 = vmatmul.mubr.bf16.gmra.mrb[20].mxu0 %v561_v52  ;;  %v552_v1 = vmax.f32 %v536_v57, 0.0 }
 0x155   :  { %v535_v0 = vadd.f32 %v519_v60, %v503_v63  ;;  %1292 = vmatpush3.bf16.msra.mxu1 %v1658_v29  ;;  %v550_v4 = vmax.f32 %v534_v62, 0.0  ;;  %v492_v29 = vpop.permute.xlu1 %491 }
 0x156   :  { %v553_v2 = vmax.f32 %v537_v25, 0.0  ;;  %1285 = vmatprep.subr.bf16.mxu1 %v1668_v35 }
 0x157   :  { %v551_v5 = vmax.f32 %v535_v0, 0.0  ;;  %v1216_v6 = vpop.f32.mrb[12].mxu0 }
 0x158   :  { %v508_v8 = vmul.f32 %v1216_v6, %v487_v3  ;;  %v332_v9 = vpop.f32.mrb[13].mxu0  ;;  %v563_v11 = vpack.c.bf16 %v553_v2, %v552_v1 }
 0x159   :  { %v506_v12 = vmul.f32 %v477_v53, %v332_v9  ;;  %1293 = vmatpush3.bf16.msra.mxu1 %v1668_v35  ;;  %v1217_v13 = vpop.f32.mrb[14].mxu0  ;;  %v562_v15 = vpack.c.bf16 %v551_v5, %v550_v4 }
 0x15a   :  { %v540_v16 = vadd.f32 %v524_v7, %v508_v8  ;;  %v509_v17 = vmul.f32 %v1217_v13, %v492_v29  ;;  %v335_v18 = vpop.f32.mrb[15].mxu0  ;;  %1286 = vmatprep.subr.bf16.mxu1 %v1678_v39 }
 0x15b   :  { %v538_v20 = vadd.f32 %v522_v10, %v506_v12  ;;  %v507_v21 = vmul.f32 %v482_v61, %v335_v18  ;;  %1242 = vmatprep.mubr.bf16.mxu1 %v562_v15 }
 0x15c   :  { %v541_v23 = vadd.f32 %v525_v14, %v509_v17  ;;  %1243 = vmatmul.mubr.bf16.gmra.mrb[8].mxu1 %v563_v11  ;;  %v556_v24 = vmax.f32 %v540_v16, 0.0 }
 0x15d   :  { %v539_v35 = vadd.f32 %v523_v19, %v507_v21  ;;  %1294 = vmatpush3.bf16.msra.mxu1 %v1678_v39  ;;  %v554_v27 = vmax.f32 %v538_v20, 0.0  ;;  %v1762_v39 = vld [vmem:[%s1813_s6] ss:$0 sm:$0xff]  ;;  %s1492_s6 = smov [#allocation11]  }
 0x15e   :  { %v557_v26 = vmax.f32 %v541_v23, 0.0  ;;  %1287 = vmatprep.subr.bf16.mxu1 %v1683_v44  ;;  %s996_s24 = sshll.u32 %s1492_s6, 4  ;;  %s997_s24 = int_to_ptr.vmem [resolvable:$true] %s996_s24 }
 0x15f   :  { %v555_v28 = vmax.f32 %v539_v35, 0.0  ;;  %s1431_s25 = scalar_lea.vmem %s997_s24, 1024  ;;  %p1436_p5 = scmp.lt.s32.totalorder %s997_s24, %s997_s24 }
 0x160   :  { %v565_v30 = vpack.c.bf16 %v557_v26, %v556_v24  ;;  %p1432_p4 = scmp.ne.s32.totalorder %s997_s24, %s1431_s25  ;;  %p1437_p6 = scmp.lt.s32.totalorder %s1431_s25, %s1431_s25 }
 0x161   :  { %1295 = vmatpush3.bf16.msra.mxu1 %v1683_v44  ;;  %v564_v31 = vpack.c.bf16 %v555_v28, %v554_v27 }
 0x162   :  { %1288 = vmatprep.subr.bf16.mxu1 %v1687_v46  ;;  %p1438_p7 = por %p1437_p6, %p1436_p5 }
 0x163   :  { %1246 = vmatprep.mubr.bf16.mxu1 %v564_v31 }
 0x164   :  { %1247 = vmatmul.mubr.bf16.gmra.mrb[12].mxu1 %v565_v30  ;;  %p1439_p8 = pnand %p1438_p7, %p1432_p4 }
 0x165   :  { %1296 = vmatpush3.bf16.msra.mxu1 %v1687_v46  ;;  %1274 = vmatprep.mubr.bf16.mxu1 %v562_v15 }
 0x166   :  { %1289 = vmatprep.subr.bf16.mxu1 %v1691_v48 }
 0x169   :  { %1297 = vmatpush3.bf16.msra.mxu1 %v1691_v48 }
 0x16c   :  { %1275 = vmatmul.mubr.bf16.vlgmr.msra.gmra.mrb[16].mxu1 %v563_v11 }
 0x16d   :  { %1278 = vmatprep.mubr.bf16.mxu1 %v564_v31 }
 0x174   :  { %1279 = vmatmul.mubr.bf16.gmra.mrb[20].mxu1 %v565_v30 }
 0x21f   :  { %v1236_v44 = vpop.f32.mrb[0].mxu1  ;;  %v1268_v32 = vpop.f32.mrb[16].mxu0 }
 0x220   :  { %v921_v33 = vadd.f32 %v1268_v32, %v1762_v39  ;;  %v664_v34 = vpop.f32.mrb[1].mxu1  ;;  %v912_v36 = vpop.f32.mrb[17].mxu0 }
 0x221   :  { %v913_v46 = vadd.f32 %v1762_v39, %v912_v36  ;;  %v1237_v37 = vpop.f32.mrb[2].mxu1  ;;  %v1269_v38 = vpop.f32.mrb[18].mxu0 }
 0x222   :  { %977 = vst [vmem:[#allocation12 + $0x10] sm:$0xff] %v921_v33  ;;  %v1099_v48 = vpack.c.bf16 %v1237_v37, %v1236_v44  ;;  %v924_v40 = vadd.f32 %v1269_v38, %v1762_v39  ;;  %v667_v41 = vpop.f32.mrb[3].mxu1  ;;  %v915_v42 = vpop.f32.mrb[19].mxu0 }
 0x223   :  { %975 = vst [vmem:[#allocation12] sm:$0xff] %v913_v46  ;;  %v1094_v43 = vpack.c.bf16 %v667_v41, %v664_v34  ;;  %v916_v45 = vadd.f32 %v1762_v39, %v915_v42 }
 0x224   :  { %1131 = vst [vmem:[#allocation11 + $0x8] sm:$0xff] %v1099_v48   ;;  %978 = vst [vmem:[#allocation12 + $0x18] sm:$0xff] %v924_v40 }
 0x225   :  { %1095 = vst [vmem:[#allocation11] sm:$0xff] %v1094_v43   ;;  %976 = vst [vmem:[#allocation12 + $0x8] sm:$0xff] %v916_v45 }
 0x227   :  { %v1240_v47 = vpop.f32.mrb[4].mxu1  ;;  %v1272_v49 = vpop.f32.mrb[20].mxu0 }
 0x228   :  { %v937_v50 = vadd.f32 %v1272_v49, %v1762_v39  ;;  %v680_v51 = vpop.f32.mrb[5].mxu1  ;;  %v928_v52 = vpop.f32.mrb[21].mxu0 }
 0x229   :  { %v929_v53 = vadd.f32 %v1762_v39, %v928_v52  ;;  %v1241_v22 = vpop.f32.mrb[6].mxu1  ;;  %v1273_v54 = vpop.f32.mrb[22].mxu0 }
 0x22a   :  { %981 = vst [vmem:[#allocation12 + $0x30] sm:$0xff] %v937_v50  ;;  %v1109_v55 = vpack.c.bf16 %v1241_v22, %v1240_v47  ;;  %v940_v56 = vadd.f32 %v1273_v54, %v1762_v39  ;;  %v683_v57 = vpop.f32.mrb[7].mxu1  ;;  %v931_v58 = vpop.f32.mrb[23].mxu0 }
 0x22b   :  { %979 = vst [vmem:[#allocation12 + $0x20] sm:$0xff] %v929_v53  ;;  %v1104_v59 = vpack.c.bf16 %v683_v57, %v680_v51  ;;  %v932_v60 = vadd.f32 %v1762_v39, %v931_v58 }
 0x22c   :  { %1133 = vst [vmem:[#allocation11 + $0x18] sm:$0xff] %v1109_v55   ;;  %982 = vst [vmem:[#allocation12 + $0x38] sm:$0xff] %v940_v56 }
 0x22d   :  { %1132 = vst [vmem:[#allocation11 + $0x10] sm:$0xff] %v1104_v59   ;;  %980 = vst [vmem:[#allocation12 + $0x28] sm:$0xff] %v932_v60 }
 0x22f   :  { %v1244_v61 = vpop.f32.mrb[8].mxu1 }
 0x230   :  { %v696_v62 = vpop.f32.mrb[9].mxu1 }
 0x231   :  { %v1245_v63 = vpop.f32.mrb[10].mxu1 }
 0x232   :  { %v1119_v25 = vpack.c.bf16 %v1245_v63, %v1244_v61  ;;  %v699_v0 = vpop.f32.mrb[11].mxu1 }
 0x233   :  { %v1114_v1 = vpack.c.bf16 %v699_v0, %v696_v62 }
 0x234   :  { %1135 = vst [vmem:[#allocation11 + $0x28] sm:$0xff] %v1119_v25  }
 0x235   :  { %1134 = vst [vmem:[#allocation11 + $0x20] sm:$0xff] %v1114_v1  }
 0x237   :  { %v1248_v2 = vpop.f32.mrb[12].mxu1 }
 0x238   :  { %v712_v3 = vpop.f32.mrb[13].mxu1 }
 0x239   :  { %v1249_v4 = vpop.f32.mrb[14].mxu1 }
 0x23a   :  { %v1129_v5 = vpack.c.bf16 %v1249_v4, %v1248_v2  ;;  %v715_v6 = vpop.f32.mrb[15].mxu1 }
 0x23b   :  { %v1124_v7 = vpack.c.bf16 %v715_v6, %v712_v3 }
 0x23c   :  { %1137 = vst [vmem:[#allocation11 + $0x38] sm:$0xff] %v1129_v5  }
 0x23d   :  { %1136 = vst [vmem:[#allocation11 + $0x30] sm:$0xff] %v1124_v7  }
 0x23e   :  { %1442 = shalt.err (!%p1439_p8)
}
 0x23f   :  { %s1443_s29 = scalar_lea.hbm %s1814_s7, 1024 }
 0x240   :  { %p1444_p9 = scmp.ne.s32.totalorder %s1814_s7, %s1443_s29  ;;  %p1447_p10 = scmp.lt.u32.totalorder %s1443_s29, %s1814_s7 }
 0x242   :  { %p1449_p11 = pnand %p1447_p10, %p1444_p9 }
 0x244   :  { %1452 = shalt.err (!%p1449_p11)
}
 0x245   :  { %1002 = dma.vmem_to_hbm [thread:$0]  %s997_s24, 1024, %s1814_s7, [#allocation5], %s1487_s17, %s1487_s17, %s1488_s18   ;;  %v1276_v8 = vpop.f32.mrb[16].mxu1 }
 0x246   :  { %v953_v9 = vadd.f32 %v1276_v8, %v1762_v39  ;;  %v944_v10 = vpop.f32.mrb[17].mxu1  ;;  %s1493_s11 = smov [#allocation12]  }
 0x247   :  { %v945_v11 = vadd.f32 %v1762_v39, %v944_v10  ;;  %v1277_v29 = vpop.f32.mrb[18].mxu1  ;;  %s1008_s12 = sshll.u32 %s1493_s11, 4  ;;  %s1009_s12 = int_to_ptr.vmem [resolvable:$true] %s1008_s12 }
 0x248   :  { %985 = vst [vmem:[#allocation12 + $0x50] sm:$0xff] %v953_v9  ;;  %v956_v12 = vadd.f32 %v1277_v29, %v1762_v39  ;;  %v947_v13 = vpop.f32.mrb[19].mxu1  ;;  %s1453_s7 = scalar_lea.vmem %s1009_s12, 2048  ;;  %p1458_p13 = scmp.lt.s32.totalorder %s1009_s12, %s1009_s12 }
 0x249   :  { %983 = vst [vmem:[#allocation12 + $0x40] sm:$0xff] %v945_v11  ;;  %v948_v14 = vadd.f32 %v1762_v39, %v947_v13  ;;  %v1280_v15 = vpop.f32.mrb[20].mxu1  ;;  %p1454_p12 = scmp.ne.s32.totalorder %s1009_s12, %s1453_s7  ;;  %p1459_p0 = scmp.lt.s32.totalorder %s1453_s7, %s1453_s7 }
 0x24a   :  { %986 = vst [vmem:[#allocation12 + $0x58] sm:$0xff] %v956_v12  ;;  %v969_v16 = vadd.f32 %v1280_v15, %v1762_v39  ;;  %v960_v17 = vpop.f32.mrb[21].mxu1 }
 0x24b   :  { %984 = vst [vmem:[#allocation12 + $0x48] sm:$0xff] %v948_v14  ;;  %v961_v18 = vadd.f32 %v1762_v39, %v960_v17  ;;  %v1281_v19 = vpop.f32.mrb[22].mxu1  ;;  %p1460_p1 = por %p1459_p0, %p1458_p13 }
 0x24c   :  { %989 = vst [vmem:[#allocation12 + $0x70] sm:$0xff] %v969_v16  ;;  %v972_v20 = vadd.f32 %v1281_v19, %v1762_v39  ;;  %v963_v21 = vpop.f32.mrb[23].mxu1 }
 0x24d   :  { %987 = vst [vmem:[#allocation12 + $0x60] sm:$0xff] %v961_v18  ;;  %v964_v23 = vadd.f32 %v1762_v39, %v963_v21  ;;  %p1461_p2 = pnand %p1460_p1, %p1454_p12 }
 0x24e   :  { %990 = vst [vmem:[#allocation12 + $0x78] sm:$0xff] %v972_v20 }
 0x24f   :  { %988 = vst [vmem:[#allocation12 + $0x68] sm:$0xff] %v964_v23 }
 0x250   :  { %1464 = shalt.err (!%p1461_p2)
}
 0x251   :  { %s1465_s13 = scalar_lea.hbm %s1815_s8, 2048 }
 0x252   :  { %p1466_p3 = scmp.ne.s32.totalorder %s1815_s8, %s1465_s13  ;;  %p1469_p4 = scmp.lt.u32.totalorder %s1465_s13, %s1815_s8 }
 0x254   :  { %p1471_p5 = pnand %p1469_p4, %p1466_p3 }
 0x256   :  { %1474 = shalt.err (!%p1471_p5)
}
 0x257   :  { %s1494_s19 = smov 128   ;;  %s1495_s20 = smov 8  }
 0x258   :  { %1014 = dma.vmem_to_hbm [thread:$0]  %s1009_s12, 2048, %s1815_s8, [#allocation13], %s1494_s19, %s1494_s19, %s1495_s20  }
 0x259   :  { %1481 = dma.done.wait [#allocation5], 1024  }
 0x25a   :  { %1482 = vsyncadd [#allocation5], 4294966272 }
 0x25b   :  { %1483 = dma.done.wait [#allocation13], 2048  }
 0x25c   :  { %1484 = vsyncadd [#allocation13], 4294965248 }
 0x25d   :  { %1021 = vsyncpa [#allocation4], 1 }
 0x25e   :  { %1022 = vsyncpa [#allocation7], 1 }
 0x25f   :  { %1023 = vsyncpa [#allocation10], 1 }
 0x260   :  { %1024 = vsyncpa [#allocation5], 1 }
 0x261   :  { %1025 = vsyncpa [#allocation13], 1 }

</bundles_post_ra>
